<compile_context>
chip_gen: v6e
topology: v6e:2x2x1
jax: 0.10.0
libtpu: 0.0.40
codegen_flags: <defaults>
</compile_context>

<pallas_src>
import functools

import jax
import jax.numpy as jnp
from jax.experimental import pallas as pl
from jax.experimental.pallas import tpu as pltpu

MAX_ITER = 6
EPSILON = 0.01


def act_cell_kernel(cat_ref, wpre_ref, wmisc_ref, out_ref, *,
                    max_iter, epsilon, in_dim, hidden):
    D, H = in_dim, hidden
    cat = cat_ref[...]                            # (TB, D+H+3)
    TB = cat.shape[0]

    # Packed constants (resident; loaded once per tile).
    wrec = wmisc_ref[0:H, :]                      # (H, H+1) = [W_hh | w_halt^T]
    wans = wmisc_ref[H:2 * H, 0:H]                # (H, H)   = W_ans lane-padded
    b_halt = wmisc_ref[2 * H:2 * H + 1, 0:1]      # (1, 1)
    b_ans = wmisc_ref[2 * H + 1:2 * H + 2, 0:H]   # (1, H)   = b_ans lane-padded

    thresh = jnp.float32(1.0 - epsilon)

    # Single prologue dot over the fused input slab:
    #   cols 0:H  = x@W_x + s_prev@W_hh + b_ctrl + w_flag   (iteration-1 pre-act)
    #   cols H:2H = x@W_x + b_ctrl                          (bias0: n >= 2, final)
    pre0 = jnp.dot(cat, wpre_ref[...], preferred_element_type=jnp.float32)
    pre_act = pre0[:, :H]
    bias0 = pre0[:, H:2 * H]

    def lane_bcast(col):                          # (TB, 1) -> (TB, H)
        return jnp.broadcast_to(col, (TB, H))

    # Halting state kept lane-replicated across H lanes (pure-VPU where/adds;
    # no per-iteration re-broadcast for p_n * s_n).
    h = jnp.zeros((TB, H), jnp.float32)
    s_acc = jnp.zeros((TB, H), jnp.float32)
    psum = jnp.zeros((TB, H), jnp.float32)        # sum of p_n (deferred b_ans)
    r_n = jnp.ones((TB, H), jnp.float32)
    R = jnp.ones((TB, H), jnp.float32)
    N = jnp.zeros((TB, H), jnp.float32)
    steps = lane_bcast(cat[:, D + H + 1:D + H + 2]) + 1.0

    # Static unrolled ACT loop (max_iter is a compile-time constant).
    for n in range(1, max_iter):
        s_n = jnp.tanh(pre_act)
        # One MXU dot per iteration: next recurrent pre-activation (cols :H)
        # and THIS step's halt logit (col H).
        full = jnp.dot(s_n, wrec, preferred_element_type=jnp.float32)
        h_n = lane_bcast(jax.nn.sigmoid(full[:, H:H + 1] + b_halt))
        h = h + h_n
        isN = h >= thresh
        p_n = jnp.where(isN, r_n, h_n)
        s_acc = s_acc + p_n * s_n
        psum = psum + p_n
        # Continuing with masked updates == PyTorch early return on isN.all():
        # halted rows contribute exactly zero from here on.
        steps = jnp.where(isN, steps, steps + 1.0)
        r_n = jnp.where(isN, 0.0, 1.0 - h)
        R = jnp.where(isN, R, r_n)
        N = jnp.where(isN, N, jnp.float32(n + 1))
        pre_act = bias0 + full[:, :H]             # boundary flag off for n >= 2

    # Final (remainder) step.  For max_iter == 1 the loop is empty and pre_act
    # still carries the boundary flag, matching the reference.
    s_fin = jnp.tanh(pre_act)
    s_acc = s_acc + r_n * s_fin
    psum = psum + r_n

    # Deferred answer projection:
    #   sum_n p_n*(s_n@W_ans + b_ans) == s_acc@W_ans + psum*b_ans.
    # bf16 operands (f32 accumulate) — strictly downstream of halting decisions.
    y = jnp.dot(s_acc.astype(jnp.bfloat16), wans.astype(jnp.bfloat16),
                preferred_element_type=jnp.float32) + psum * b_ans   # (TB, H)
    ponder = lane_bcast(cat[:, D + H:D + H + 1]) + R + N

    # One lane-dense unmasked store: [y|pad, s_acc, ponder, steps] -> 4H lanes.
    out_ref[...] = jnp.concatenate([y, s_acc, ponder, steps], axis=1)


def pack_params(raw):
    """One-time host-side packing of the ACT cell parameters."""
    D, H = raw["W_x"].shape
    O = raw["W_ans"].shape[1]
    assert O <= H

    # Prologue weight over the fused slab [x | s_prev | ponder | steps | 1]:
    #   cols 0:H  -> x@W_x + s_prev@W_hh + (b_ctrl + w_flag)
    #   cols H:2H -> x@W_x + b_ctrl
    wpre = jnp.zeros((D + H + 3, 2 * H), jnp.float32)
    wpre = wpre.at[:D, :H].set(raw["W_x"])
    wpre = wpre.at[:D, H:].set(raw["W_x"])
    wpre = wpre.at[D:D + H, :H].set(raw["W_hh"])
    wpre = wpre.at[D + H + 2, :H].set(raw["b_ctrl"][0] + raw["w_flag"][0])
    wpre = wpre.at[D + H + 2, H:].set(raw["b_ctrl"][0])

    # Misc constant: rows 0:H = [W_hh | w_halt^T]; rows H:2H = W_ans (padded to
    # H output lanes); row 2H = b_halt (lane 0); row 2H+1 = b_ans (padded).
    wmisc = jnp.zeros((2 * H + 2, H + 1), jnp.float32)
    wmisc = wmisc.at[:H, :H].set(raw["W_hh"])
    wmisc = wmisc.at[:H, H].set(raw["w_halt"][0])
    wmisc = wmisc.at[H:2 * H, :O].set(raw["W_ans"])
    wmisc = wmisc.at[2 * H, 0].set(raw["b_halt"][0, 0])
    wmisc = wmisc.at[2 * H + 1, :O].set(raw["b_ans"][0])

    return {"W_pre": wpre, "W_misc": wmisc, "D": D, "H": H, "O": O}


def _pick_batch_tile(batch, cap=1024):
    """Largest batch tile <= cap that divides the batch; for large batches this
    keeps >= 2 grid tiles so v7x's two TensorCores both get work."""
    if batch <= cap:
        return batch
    start = min(cap, (batch // 2) // 8 * 8)
    for tb in range(start, 0, -8):
        if batch % tb == 0:
            return tb
    return batch   # no multiple-of-8 divisor: fall back to one full tile


def act_cell(x, prev_hidden, prev_ponder, prev_steps, packed):
    B, D = x.shape
    H = prev_hidden.shape[1]
    O = packed["O"]
    assert packed["D"] == D and packed["H"] == H

    # Fuse the four per-row inputs (+ a constant-one column that feeds the
    # biases/boundary flag through the prologue dot) into one contiguous slab.
    ones = jnp.ones((B, 1), jnp.float32)
    cat = jnp.concatenate([x, prev_hidden, prev_ponder, prev_steps, ones], axis=1)

    TB = _pick_batch_tile(B)
    assert B % TB == 0 and (TB % 8 == 0 or TB == B)
    grid = (B // TB,)
    W_out = 4 * H            # 128 lanes at H=32 -> unmasked full-lane stores

    kernel = functools.partial(act_cell_kernel, max_iter=MAX_ITER,
                               epsilon=EPSILON, in_dim=D, hidden=H)

    slab = pl.pallas_call(
        kernel,
        grid=grid,
        out_shape=jax.ShapeDtypeStruct((B, W_out), jnp.float32),
        in_specs=[
            pl.BlockSpec((TB, D + H + 3), lambda i: (i, 0)),       # fused inputs
            pl.BlockSpec(packed["W_pre"].shape, lambda i: (0, 0)),  # resident
            pl.BlockSpec(packed["W_misc"].shape, lambda i: (0, 0)),  # resident
        ],
        out_specs=pl.BlockSpec((TB, W_out), lambda i: (i, 0)),
        compiler_params=pltpu.CompilerParams(
            dimension_semantics=("parallel",)),   # shard tiles over 2 TCs (v7x)
    )(cat, packed["W_pre"], packed["W_misc"])

    y = slab[:, :O]
    s = slab[:, H:2 * H]
    ponder = slab[:, 2 * H:2 * H + 1]
    steps = slab[:, 3 * H:3 * H + 1]
    return y, s, ponder, steps


def act_cell_ref(x, prev_hidden, prev_ponder, prev_steps, params):
    """Pure-JAX reference (faithful to the PyTorch module, full precision)."""
    hi = jax.lax.Precision.HIGHEST
    B = x.shape[0]
    O = params["W_ans"].shape[1]
    xW = jnp.dot(x, params["W_x"], precision=hi)
    s_n = prev_hidden
    y = jnp.zeros((B, O), jnp.float32)
    h = jnp.zeros((B, 1), jnp.float32)
    s_acc = jnp.zeros_like(prev_hidden)
    r_n = jnp.ones((B, 1), jnp.float32)
    R = jnp.ones((B, 1), jnp.float32)
    N = jnp.zeros((B, 1), jnp.float32)
    steps = prev_steps + 1.0

    def ctrl(flag_on, s_prev):
        pre = xW + jnp.dot(s_prev, params["W_hh"], precision=hi) + params["b_ctrl"]
        if flag_on:
            pre = pre + params["w_flag"]
        return jnp.tanh(pre)

    for n in range(1, MAX_ITER):
        s_n = ctrl(n == 1, s_n)
        h_n = jax.nn.sigmoid(jnp.sum(s_n * params["w_halt"], -1, keepdims=True)
                             + params["b_halt"])
        y_n = jnp.dot(s_n, params["W_ans"], precision=hi) + params["b_ans"]
        h = h + h_n
        isN = h >= (1.0 - EPSILON)
        p_n = jnp.where(isN, r_n, h_n)
        y = y + p_n * y_n
        s_acc = s_acc + p_n * s_n
        steps = jnp.where(isN, steps, steps + 1.0)
        r_n = jnp.where(isN, 0.0, 1.0 - h)
        R = jnp.where(isN, R, r_n)
        N = jnp.where(isN, N, float(n + 1))

    s_n = ctrl(MAX_ITER == 1, s_n)
    y_n = jnp.dot(s_n, params["W_ans"], precision=hi) + params["b_ans"]
    y = y + r_n * y_n
    s_acc = s_acc + r_n * s_n
    return y, s_acc, prev_ponder + R + N, steps


if __name__ == "__main__":
    B, D, H, O = 8, 16, 32, 8

    key = jax.random.PRNGKey(0)
    keys = jax.random.split(key, 10)

    def init(k, shape, scale=0.1):
        return jax.random.normal(k, shape, jnp.float32) * scale

    params = {
        "W_x":    init(keys[0], (D, H)),
        "w_flag": init(keys[1], (1, H)),
        "W_hh":   init(keys[2], (H, H)),
        "b_ctrl": init(keys[3], (1, H)),
        "w_halt": init(keys[4], (1, H)),
        "b_halt": init(keys[5], (1, 1)),
        "W_ans":  init(keys[6], (H, O)),
        "b_ans":  init(keys[7], (1, O)),
    }
    packed = pack_params(params)          # one-time host-side packing

    x = init(keys[8], (B, D), scale=1.0)
    prev_hidden = init(keys[9], (B, H), scale=0.5)
    prev_ponder = jnp.zeros((B, 1), jnp.float32)
    prev_steps = jnp.zeros((B, 1), jnp.float32)

    outs = act_cell(x, prev_hidden, prev_ponder, prev_steps, packed)
    outs = jax.block_until_ready(outs)

    refs = act_cell_ref(x, prev_hidden, prev_ponder, prev_steps, params)
    for name, o, r in zip(("y", "s", "ponder", "steps"), outs, refs):
        assert o.shape == r.shape and o.dtype == r.dtype, name
        assert jnp.allclose(o, r, rtol=1e-2, atol=1e-2), (name, o, r)
    # Halting decisions are discrete (steps/N change by >= 1 on any flip):
    # demand exact agreement with the full-precision reference.
    assert bool(jnp.array_equal(outs[3], refs[3])), (outs[3], refs[3])

    print("KERNEL_OK")
</pallas_src>

<mosaic_0001>
module attributes {stable_mosaic.version = 11 : i64} {
  func.func @act_cell_kernel(%arg0: i32, %arg1: memref<8x51xf32, #tpu.memory_space<vmem>>, %arg2: memref<51x64xf32, #tpu.memory_space<vmem>>, %arg3: memref<66x33xf32, #tpu.memory_space<vmem>>, %arg4: memref<8x128xf32, #tpu.memory_space<vmem>>) attributes {dimension_semantics = [#tpu.dimension_semantics<parallel>], iteration_bounds = array<i64: 1>, scalar_prefetch = 0 : i64, scratch_operands = 0 : i64, tpu.core_type = #tpu.core_type<tc>, window_params = [{transform_indices = @transform_0, window_bounds = array<i64: 8, 51>}, {pipeline_mode = #tpu.pipeline_mode<synchronous>, transform_indices = @transform_1, window_bounds = array<i64: 51, 64>}, {pipeline_mode = #tpu.pipeline_mode<synchronous>, transform_indices = @transform_2, window_bounds = array<i64: 66, 33>}, {transform_indices = @transform_3, window_bounds = array<i64: 8, 128>}]} {
    %c0 = arith.constant 0 : index
    %c0_0 = arith.constant 0 : index
    %0 = vector.load %arg1[%c0, %c0_0] : memref<8x51xf32, #tpu.memory_space<vmem>>, vector<8x51xf32>
    %c0_1 = arith.constant 0 : index
    %c0_2 = arith.constant 0 : index
    %1 = vector.load %arg3[%c0_1, %c0_2] : memref<66x33xf32, #tpu.memory_space<vmem>>, vector<32x33xf32>
    %c32 = arith.constant 32 : index
    %c0_3 = arith.constant 0 : index
    %2 = vector.load %arg3[%c32, %c0_3] : memref<66x33xf32, #tpu.memory_space<vmem>>, vector<32x32xf32>
    %c64 = arith.constant 64 : index
    %c0_4 = arith.constant 0 : index
    %3 = vector.load %arg3[%c64, %c0_4] : memref<66x33xf32, #tpu.memory_space<vmem>>, vector<1x1xf32>
    %c65 = arith.constant 65 : index
    %c0_5 = arith.constant 0 : index
    %4 = vector.load %arg3[%c65, %c0_5] : memref<66x33xf32, #tpu.memory_space<vmem>>, vector<1x32xf32>
    %c0_6 = arith.constant 0 : index
    %c0_7 = arith.constant 0 : index
    %5 = vector.load %arg2[%c0_6, %c0_7] : memref<51x64xf32, #tpu.memory_space<vmem>>, vector<51x64xf32>
    %cst = arith.constant dense<0.000000e+00> : vector<8x64xf32>
    %6 = tpu.matmul %0, %5, %cst {dimension_numbers = #tpu.dot_dimension_numbers<[1], [0], [0], [1], [0, 0, 1, 1], [], []>} : vector<8x51xf32>, vector<51x64xf32>, vector<8x64xf32> -> vector<8x64xf32>
    %7 = vector.extract_strided_slice %6 {offsets = [0, 0], sizes = [8, 32], strides = [1, 1]} : vector<8x64xf32> to vector<8x32xf32>
    %8 = vector.extract_strided_slice %6 {offsets = [0, 32], sizes = [8, 32], strides = [1, 1]} : vector<8x64xf32> to vector<8x32xf32>
    %cst_8 = arith.constant 0.000000e+00 : f32
    %9 = vector.broadcast %cst_8 : f32 to vector<8x32xf32>
    %cst_9 = arith.constant 0.000000e+00 : f32
    %10 = vector.broadcast %cst_9 : f32 to vector<8x32xf32>
    %cst_10 = arith.constant 0.000000e+00 : f32
    %11 = vector.broadcast %cst_10 : f32 to vector<8x32xf32>
    %cst_11 = arith.constant 1.000000e+00 : f32
    %12 = vector.broadcast %cst_11 : f32 to vector<8x32xf32>
    %cst_12 = arith.constant 1.000000e+00 : f32
    %13 = vector.broadcast %cst_12 : f32 to vector<8x32xf32>
    %cst_13 = arith.constant 0.000000e+00 : f32
    %14 = vector.broadcast %cst_13 : f32 to vector<8x32xf32>
    %15 = vector.extract_strided_slice %0 {offsets = [0, 49], sizes = [8, 1], strides = [1, 1]} : vector<8x51xf32> to vector<8x1xf32>
    %16 = vector.shape_cast %15 : vector<8x1xf32> to vector<8x1xf32>
    %17 = vector.broadcast %16 : vector<8x1xf32> to vector<8x32xf32>
    %cst_14 = arith.constant 1.000000e+00 : f32
    %18 = vector.broadcast %cst_14 : f32 to vector<8x32xf32>
    %19 = arith.addf %17, %18 : vector<8x32xf32>
    %20 = math.tanh %7 : vector<8x32xf32>
    %cst_15 = arith.constant dense<0.000000e+00> : vector<8x33xf32>
    %21 = tpu.matmul %20, %1, %cst_15 {dimension_numbers = #tpu.dot_dimension_numbers<[1], [0], [0], [1], [0, 0, 1, 1], [], []>} : vector<8x32xf32>, vector<32x33xf32>, vector<8x33xf32> -> vector<8x33xf32>
    %22 = vector.extract_strided_slice %21 {offsets = [0, 32], sizes = [8, 1], strides = [1, 1]} : vector<8x33xf32> to vector<8x1xf32>
    %23 = vector.broadcast %3 : vector<1x1xf32> to vector<8x1xf32>
    %24 = arith.addf %22, %23 : vector<8x1xf32>
    %25 = arith.negf %24 : vector<8x1xf32>
    %26 = math.exp %25 : vector<8x1xf32>
    %cst_16 = arith.constant 1.000000e+00 : f32
    %27 = vector.broadcast %cst_16 : f32 to vector<8x1xf32>
    %28 = arith.addf %27, %26 : vector<8x1xf32>
    %29 = arith.divf %27, %28 : vector<8x1xf32>
    %30 = vector.shape_cast %29 : vector<8x1xf32> to vector<8x1xf32>
    %31 = vector.broadcast %30 : vector<8x1xf32> to vector<8x32xf32>
    %32 = arith.addf %9, %31 : vector<8x32xf32>
    %cst_17 = arith.constant 9.900000e-01 : f32
    %33 = vector.broadcast %cst_17 : f32 to vector<8x32xf32>
    %34 = arith.cmpf oge, %32, %33 : vector<8x32xf32>
    %35 = arith.select %34, %12, %31 : vector<8x32xi1>, vector<8x32xf32>
    %36 = arith.mulf %35, %20 : vector<8x32xf32>
    %37 = arith.addf %10, %36 : vector<8x32xf32>
    %38 = arith.addf %11, %35 : vector<8x32xf32>
    %cst_18 = arith.constant 1.000000e+00 : f32
    %39 = vector.broadcast %cst_18 : f32 to vector<8x32xf32>
    %40 = arith.addf %19, %39 : vector<8x32xf32>
    %41 = arith.select %34, %19, %40 : vector<8x32xi1>, vector<8x32xf32>
    %cst_19 = arith.constant 1.000000e+00 : f32
    %42 = vector.broadcast %cst_19 : f32 to vector<8x32xf32>
    %43 = arith.subf %42, %32 : vector<8x32xf32>
    %cst_20 = arith.constant 0.000000e+00 : f32
    %44 = vector.broadcast %cst_20 : f32 to vector<8x32xf32>
    %45 = arith.select %34, %44, %43 : vector<8x32xi1>, vector<8x32xf32>
    %46 = arith.select %34, %13, %45 : vector<8x32xi1>, vector<8x32xf32>
    %cst_21 = arith.constant 2.000000e+00 : f32
    %47 = vector.broadcast %cst_21 : f32 to vector<8x32xf32>
    %48 = arith.select %34, %14, %47 : vector<8x32xi1>, vector<8x32xf32>
    %49 = vector.extract_strided_slice %21 {offsets = [0, 0], sizes = [8, 32], strides = [1, 1]} : vector<8x33xf32> to vector<8x32xf32>
    %50 = arith.addf %8, %49 : vector<8x32xf32>
    %51 = math.tanh %50 : vector<8x32xf32>
    %cst_22 = arith.constant dense<0.000000e+00> : vector<8x33xf32>
    %52 = tpu.matmul %51, %1, %cst_22 {dimension_numbers = #tpu.dot_dimension_numbers<[1], [0], [0], [1], [0, 0, 1, 1], [], []>} : vector<8x32xf32>, vector<32x33xf32>, vector<8x33xf32> -> vector<8x33xf32>
    %53 = vector.extract_strided_slice %52 {offsets = [0, 32], sizes = [8, 1], strides = [1, 1]} : vector<8x33xf32> to vector<8x1xf32>
    %54 = vector.broadcast %3 : vector<1x1xf32> to vector<8x1xf32>
    %55 = arith.addf %53, %54 : vector<8x1xf32>
    %56 = arith.negf %55 : vector<8x1xf32>
    %57 = math.exp %56 : vector<8x1xf32>
    %cst_23 = arith.constant 1.000000e+00 : f32
    %58 = vector.broadcast %cst_23 : f32 to vector<8x1xf32>
    %59 = arith.addf %58, %57 : vector<8x1xf32>
    %60 = arith.divf %58, %59 : vector<8x1xf32>
    %61 = vector.shape_cast %60 : vector<8x1xf32> to vector<8x1xf32>
    %62 = vector.broadcast %61 : vector<8x1xf32> to vector<8x32xf32>
    %63 = arith.addf %32, %62 : vector<8x32xf32>
    %cst_24 = arith.constant 9.900000e-01 : f32
    %64 = vector.broadcast %cst_24 : f32 to vector<8x32xf32>
    %65 = arith.cmpf oge, %63, %64 : vector<8x32xf32>
    %66 = arith.select %65, %45, %62 : vector<8x32xi1>, vector<8x32xf32>
    %67 = arith.mulf %66, %51 : vector<8x32xf32>
    %68 = arith.addf %37, %67 : vector<8x32xf32>
    %69 = arith.addf %38, %66 : vector<8x32xf32>
    %cst_25 = arith.constant 1.000000e+00 : f32
    %70 = vector.broadcast %cst_25 : f32 to vector<8x32xf32>
    %71 = arith.addf %41, %70 : vector<8x32xf32>
    %72 = arith.select %65, %41, %71 : vector<8x32xi1>, vector<8x32xf32>
    %cst_26 = arith.constant 1.000000e+00 : f32
    %73 = vector.broadcast %cst_26 : f32 to vector<8x32xf32>
    %74 = arith.subf %73, %63 : vector<8x32xf32>
    %cst_27 = arith.constant 0.000000e+00 : f32
    %75 = vector.broadcast %cst_27 : f32 to vector<8x32xf32>
    %76 = arith.select %65, %75, %74 : vector<8x32xi1>, vector<8x32xf32>
    %77 = arith.select %65, %46, %76 : vector<8x32xi1>, vector<8x32xf32>
    %cst_28 = arith.constant 3.000000e+00 : f32
    %78 = vector.broadcast %cst_28 : f32 to vector<8x32xf32>
    %79 = arith.select %65, %48, %78 : vector<8x32xi1>, vector<8x32xf32>
    %80 = vector.extract_strided_slice %52 {offsets = [0, 0], sizes = [8, 32], strides = [1, 1]} : vector<8x33xf32> to vector<8x32xf32>
    %81 = arith.addf %8, %80 : vector<8x32xf32>
    %82 = math.tanh %81 : vector<8x32xf32>
    %cst_29 = arith.constant dense<0.000000e+00> : vector<8x33xf32>
    %83 = tpu.matmul %82, %1, %cst_29 {dimension_numbers = #tpu.dot_dimension_numbers<[1], [0], [0], [1], [0, 0, 1, 1], [], []>} : vector<8x32xf32>, vector<32x33xf32>, vector<8x33xf32> -> vector<8x33xf32>
    %84 = vector.extract_strided_slice %83 {offsets = [0, 32], sizes = [8, 1], strides = [1, 1]} : vector<8x33xf32> to vector<8x1xf32>
    %85 = vector.broadcast %3 : vector<1x1xf32> to vector<8x1xf32>
    %86 = arith.addf %84, %85 : vector<8x1xf32>
    %87 = arith.negf %86 : vector<8x1xf32>
    %88 = math.exp %87 : vector<8x1xf32>
    %cst_30 = arith.constant 1.000000e+00 : f32
    %89 = vector.broadcast %cst_30 : f32 to vector<8x1xf32>
    %90 = arith.addf %89, %88 : vector<8x1xf32>
    %91 = arith.divf %89, %90 : vector<8x1xf32>
    %92 = vector.shape_cast %91 : vector<8x1xf32> to vector<8x1xf32>
    %93 = vector.broadcast %92 : vector<8x1xf32> to vector<8x32xf32>
    %94 = arith.addf %63, %93 : vector<8x32xf32>
    %cst_31 = arith.constant 9.900000e-01 : f32
    %95 = vector.broadcast %cst_31 : f32 to vector<8x32xf32>
    %96 = arith.cmpf oge, %94, %95 : vector<8x32xf32>
    %97 = arith.select %96, %76, %93 : vector<8x32xi1>, vector<8x32xf32>
    %98 = arith.mulf %97, %82 : vector<8x32xf32>
    %99 = arith.addf %68, %98 : vector<8x32xf32>
    %100 = arith.addf %69, %97 : vector<8x32xf32>
    %cst_32 = arith.constant 1.000000e+00 : f32
    %101 = vector.broadcast %cst_32 : f32 to vector<8x32xf32>
    %102 = arith.addf %72, %101 : vector<8x32xf32>
    %103 = arith.select %96, %72, %102 : vector<8x32xi1>, vector<8x32xf32>
    %cst_33 = arith.constant 1.000000e+00 : f32
    %104 = vector.broadcast %cst_33 : f32 to vector<8x32xf32>
    %105 = arith.subf %104, %94 : vector<8x32xf32>
    %cst_34 = arith.constant 0.000000e+00 : f32
    %106 = vector.broadcast %cst_34 : f32 to vector<8x32xf32>
    %107 = arith.select %96, %106, %105 : vector<8x32xi1>, vector<8x32xf32>
    %108 = arith.select %96, %77, %107 : vector<8x32xi1>, vector<8x32xf32>
    %cst_35 = arith.constant 4.000000e+00 : f32
    %109 = vector.broadcast %cst_35 : f32 to vector<8x32xf32>
    %110 = arith.select %96, %79, %109 : vector<8x32xi1>, vector<8x32xf32>
    %111 = vector.extract_strided_slice %83 {offsets = [0, 0], sizes = [8, 32], strides = [1, 1]} : vector<8x33xf32> to vector<8x32xf32>
    %112 = arith.addf %8, %111 : vector<8x32xf32>
    %113 = math.tanh %112 : vector<8x32xf32>
    %cst_36 = arith.constant dense<0.000000e+00> : vector<8x33xf32>
    %114 = tpu.matmul %113, %1, %cst_36 {dimension_numbers = #tpu.dot_dimension_numbers<[1], [0], [0], [1], [0, 0, 1, 1], [], []>} : vector<8x32xf32>, vector<32x33xf32>, vector<8x33xf32> -> vector<8x33xf32>
    %115 = vector.extract_strided_slice %114 {offsets = [0, 32], sizes = [8, 1], strides = [1, 1]} : vector<8x33xf32> to vector<8x1xf32>
    %116 = vector.broadcast %3 : vector<1x1xf32> to vector<8x1xf32>
    %117 = arith.addf %115, %116 : vector<8x1xf32>
    %118 = arith.negf %117 : vector<8x1xf32>
    %119 = math.exp %118 : vector<8x1xf32>
    %cst_37 = arith.constant 1.000000e+00 : f32
    %120 = vector.broadcast %cst_37 : f32 to vector<8x1xf32>
    %121 = arith.addf %120, %119 : vector<8x1xf32>
    %122 = arith.divf %120, %121 : vector<8x1xf32>
    %123 = vector.shape_cast %122 : vector<8x1xf32> to vector<8x1xf32>
    %124 = vector.broadcast %123 : vector<8x1xf32> to vector<8x32xf32>
    %125 = arith.addf %94, %124 : vector<8x32xf32>
    %cst_38 = arith.constant 9.900000e-01 : f32
    %126 = vector.broadcast %cst_38 : f32 to vector<8x32xf32>
    %127 = arith.cmpf oge, %125, %126 : vector<8x32xf32>
    %128 = arith.select %127, %107, %124 : vector<8x32xi1>, vector<8x32xf32>
    %129 = arith.mulf %128, %113 : vector<8x32xf32>
    %130 = arith.addf %99, %129 : vector<8x32xf32>
    %131 = arith.addf %100, %128 : vector<8x32xf32>
    %cst_39 = arith.constant 1.000000e+00 : f32
    %132 = vector.broadcast %cst_39 : f32 to vector<8x32xf32>
    %133 = arith.addf %103, %132 : vector<8x32xf32>
    %134 = arith.select %127, %103, %133 : vector<8x32xi1>, vector<8x32xf32>
    %cst_40 = arith.constant 1.000000e+00 : f32
    %135 = vector.broadcast %cst_40 : f32 to vector<8x32xf32>
    %136 = arith.subf %135, %125 : vector<8x32xf32>
    %cst_41 = arith.constant 0.000000e+00 : f32
    %137 = vector.broadcast %cst_41 : f32 to vector<8x32xf32>
    %138 = arith.select %127, %137, %136 : vector<8x32xi1>, vector<8x32xf32>
    %139 = arith.select %127, %108, %138 : vector<8x32xi1>, vector<8x32xf32>
    %cst_42 = arith.constant 5.000000e+00 : f32
    %140 = vector.broadcast %cst_42 : f32 to vector<8x32xf32>
    %141 = arith.select %127, %110, %140 : vector<8x32xi1>, vector<8x32xf32>
    %142 = vector.extract_strided_slice %114 {offsets = [0, 0], sizes = [8, 32], strides = [1, 1]} : vector<8x33xf32> to vector<8x32xf32>
    %143 = arith.addf %8, %142 : vector<8x32xf32>
    %144 = math.tanh %143 : vector<8x32xf32>
    %cst_43 = arith.constant dense<0.000000e+00> : vector<8x33xf32>
    %145 = tpu.matmul %144, %1, %cst_43 {dimension_numbers = #tpu.dot_dimension_numbers<[1], [0], [0], [1], [0, 0, 1, 1], [], []>} : vector<8x32xf32>, vector<32x33xf32>, vector<8x33xf32> -> vector<8x33xf32>
    %146 = vector.extract_strided_slice %145 {offsets = [0, 32], sizes = [8, 1], strides = [1, 1]} : vector<8x33xf32> to vector<8x1xf32>
    %147 = vector.broadcast %3 : vector<1x1xf32> to vector<8x1xf32>
    %148 = arith.addf %146, %147 : vector<8x1xf32>
    %149 = arith.negf %148 : vector<8x1xf32>
    %150 = math.exp %149 : vector<8x1xf32>
    %cst_44 = arith.constant 1.000000e+00 : f32
    %151 = vector.broadcast %cst_44 : f32 to vector<8x1xf32>
    %152 = arith.addf %151, %150 : vector<8x1xf32>
    %153 = arith.divf %151, %152 : vector<8x1xf32>
    %154 = vector.shape_cast %153 : vector<8x1xf32> to vector<8x1xf32>
    %155 = vector.broadcast %154 : vector<8x1xf32> to vector<8x32xf32>
    %156 = arith.addf %125, %155 : vector<8x32xf32>
    %cst_45 = arith.constant 9.900000e-01 : f32
    %157 = vector.broadcast %cst_45 : f32 to vector<8x32xf32>
    %158 = arith.cmpf oge, %156, %157 : vector<8x32xf32>
    %159 = arith.select %158, %138, %155 : vector<8x32xi1>, vector<8x32xf32>
    %160 = arith.mulf %159, %144 : vector<8x32xf32>
    %161 = arith.addf %130, %160 : vector<8x32xf32>
    %162 = arith.addf %131, %159 : vector<8x32xf32>
    %cst_46 = arith.constant 1.000000e+00 : f32
    %163 = vector.broadcast %cst_46 : f32 to vector<8x32xf32>
    %164 = arith.addf %134, %163 : vector<8x32xf32>
    %165 = arith.select %158, %134, %164 : vector<8x32xi1>, vector<8x32xf32>
    %cst_47 = arith.constant 1.000000e+00 : f32
    %166 = vector.broadcast %cst_47 : f32 to vector<8x32xf32>
    %167 = arith.subf %166, %156 : vector<8x32xf32>
    %cst_48 = arith.constant 0.000000e+00 : f32
    %168 = vector.broadcast %cst_48 : f32 to vector<8x32xf32>
    %169 = arith.select %158, %168, %167 : vector<8x32xi1>, vector<8x32xf32>
    %170 = arith.select %158, %139, %169 : vector<8x32xi1>, vector<8x32xf32>
    %cst_49 = arith.constant 6.000000e+00 : f32
    %171 = vector.broadcast %cst_49 : f32 to vector<8x32xf32>
    %172 = arith.select %158, %141, %171 : vector<8x32xi1>, vector<8x32xf32>
    %173 = vector.extract_strided_slice %145 {offsets = [0, 0], sizes = [8, 32], strides = [1, 1]} : vector<8x33xf32> to vector<8x32xf32>
    %174 = arith.addf %8, %173 : vector<8x32xf32>
    %175 = math.tanh %174 : vector<8x32xf32>
    %176 = arith.mulf %169, %175 : vector<8x32xf32>
    %177 = arith.addf %161, %176 : vector<8x32xf32>
    %178 = arith.addf %162, %169 : vector<8x32xf32>
    %179 = arith.truncf %177 : vector<8x32xf32> to vector<8x32xbf16>
    %180 = arith.truncf %2 : vector<32x32xf32> to vector<32x32xbf16>
    %cst_50 = arith.constant dense<0.000000e+00> : vector<8x32xf32>
    %181 = tpu.matmul %179, %180, %cst_50 {dimension_numbers = #tpu.dot_dimension_numbers<[1], [0], [0], [1], [0, 0, 1, 1], [], []>} : vector<8x32xbf16>, vector<32x32xbf16>, vector<8x32xf32> -> vector<8x32xf32>
    %182 = vector.broadcast %4 : vector<1x32xf32> to vector<8x32xf32>
    %183 = arith.mulf %178, %182 : vector<8x32xf32>
    %184 = arith.addf %181, %183 : vector<8x32xf32>
    %185 = vector.extract_strided_slice %0 {offsets = [0, 48], sizes = [8, 1], strides = [1, 1]} : vector<8x51xf32> to vector<8x1xf32>
    %186 = vector.shape_cast %185 : vector<8x1xf32> to vector<8x1xf32>
    %187 = vector.broadcast %186 : vector<8x1xf32> to vector<8x32xf32>
    %188 = arith.addf %187, %170 : vector<8x32xf32>
    %189 = arith.addf %188, %172 : vector<8x32xf32>
    %190 = tpu.concatenate %184, %177, %189, %165 in 1 : vector<8x32xf32>, vector<8x32xf32>, vector<8x32xf32>, vector<8x32xf32> -> vector<8x128xf32>
    %c0_51 = arith.constant 0 : index
    %c0_52 = arith.constant 0 : index
    %191 = vector.load %arg4[%c0_51, %c0_52] : memref<8x128xf32, #tpu.memory_space<vmem>>, vector<8x128xf32>
    tpu.vector_store %arg4[%c0_51, %c0_52], %190 {strides = array<i32>} : memref<8x128xf32, #tpu.memory_space<vmem>>, vector<8x128xf32>,
    return
  }
  func.func @transform_0(%arg0: i32) -> (i32, i32) {
    %c0_i32 = arith.constant 0 : i32
    %c0_i32_0 = arith.constant 0 : i32
    return %arg0, %c0_i32 : i32, i32
  }
  func.func @transform_1(%arg0: i32) -> (i32, i32) {
    %c0_i32 = arith.constant 0 : i32
    %c0_i32_0 = arith.constant 0 : i32
    %c0_i32_1 = arith.constant 0 : i32
    return %c0_i32, %c0_i32_0 : i32, i32
  }
  func.func @transform_2(%arg0: i32) -> (i32, i32) {
    %c0_i32 = arith.constant 0 : i32
    %c0_i32_0 = arith.constant 0 : i32
    %c0_i32_1 = arith.constant 0 : i32
    return %c0_i32, %c0_i32_0 : i32, i32
  }
  func.func @transform_3(%arg0: i32) -> (i32, i32) {
    %c0_i32 = arith.constant 0 : i32
    %c0_i32_0 = arith.constant 0 : i32
    return %arg0, %c0_i32 : i32, i32
  }
}

</mosaic_0001>

<bundles_post_ra>
// kernel: tpu_custom_call.1
= control target key start
LH: loop header
LB: loop body
LE: loop exit
PB: predicated region body
PF: predicated region fallthrough
CT: control target
= control target key end

     0   :  { %vm38_vm0 = vcmask 1042432   ;;  %v952_v1 = vmov 0.0   ;;  %vm953_vm1 = vmmov 0   ;;  %s1241_s0 = inlined_call_operand.vmem [shape: f32[8,51], index: 0, kind: input, shape index: {}]   ;;  %s1242_s1 = inlined_call_operand.vmem [shape: f32[51,64], index: 1, kind: input, shape index: {}]   ;;  %s1243_s2 = inlined_call_operand.vmem [shape: f32[66,33], index: 2, kind: input, shape index: {}]   ;;  %s1244_s3 = inlined_call_operand.hbm [shape: f32[8,128], index: 3, kind: output, shape index: {}]  }
   0x1   :  { %v33_v0 = vld [vmem:[%s1242_s1 + $0x30] sm:$0x7]  ;;  %805 = vmatprep.subr.mxu0 %v952_v1  ;;  %v32_v2 = vld [vmem:[%s1242_s1 + $0x28] sm:$0xff]  ;;  %822 = vmatprep.subr.mxu1 %v952_v1 }
   0x2   :  { %806 = vmatpush3.msk.msra.mxu0 %vm38_vm0, %v33_v0  ;;  %819 = vmatprep.mubr.msk.f32.mxu0 %vm953_vm1, %v952_v1 }
   0x3   :  { %8 = vsyncpa [#allocation3], 0  ;;  %807 = vmatprep.subr.mxu0 %v952_v1  ;;  %v31_v3 = vld [vmem:[%s1242_s1 + $0x20] sm:$0xff]  ;;  %830 = vmatprep.mubr.msk.f32.mxu1 %vm953_vm1, %v952_v1  ;;  %v30_v4 = vld [vmem:[%s1242_s1 + $0x18] sm:$0xff]  ;;  %vm34_vm2 = vcmask 416768   ;;  %vm118_vm3 = vcmask 261120  }
   0x4   :  { %808 = vmatpush3.msra.mxu0 %v32_v2  ;;  %v29_v5 = vld [vmem:[%s1242_s1 + $0x10] sm:$0xff]  ;;  %v28_v6 = vld [vmem:[%s1242_s1 + $0x8] sm:$0xff]  ;;  %v27_v7 = vld [vmem:[%s1242_s1] sm:$0xff]  ;;  %s954_s7 = smov 32   ;;  %s955_s8 = smov 96   ;;  %v956_v37 = vmov 32  }
   0x5   :  { %809 = vmatprep.subr.mxu0 %v952_v1  ;;  %v1016_v8 = vld [vmem:[%s1241_s0] sm:$0xff]  ;;  %v1026_v9 = vld [vmem:[%s1243_s2 + $0x18] sm:$0xff]  ;;  %v1031_v10 = vld [vmem:[%s1243_s2 + $0x10] sm:$0xff]  ;;  %895 = vset.pattern.permute.xlu0 %v956_v37  ;;  %vm735_vm9 = vcmask 523264   ;;  %s960_s21 = smov [#allocation2]   ;;  %vm737_vm10 = vcmask 785408  }
   0x6   :  { %810 = vmatpush3.msra.mxu0 %v31_v3  ;;  %823 = vmatpush3.msra.mxu1 %v1026_v9  ;;  %v1039_v11 = vld [vmem:[%s1243_s2 + $0x8] sm:$0xff]  ;;  %v17_v12 = vld [vmem:[%s1243_s2] sm:$0xff] }
   0x7   :  { %811 = vmatprep.subr.mxu0 %v952_v1  ;;  %824 = vmatprep.subr.mxu1 %v952_v1  ;;  %v757_v36 = vld [vmem:[%s1243_s2 + $0x40] ss:$0 sm:$0xff] }
   0x8   :  { %812 = vmatpush3.msra.mxu0 %v30_v4  ;;  %825 = vmatpush3.msra.mxu1 %v1031_v10 }
   0x9   :  { %813 = vmatprep.subr.mxu0 %v952_v1  ;;  %826 = vmatprep.subr.mxu1 %v952_v1 }
   0xa   :  { %814 = vmatpush3.msra.mxu0 %v29_v5  ;;  %827 = vmatpush3.msra.mxu1 %v1039_v11 }
   0xb   :  { %815 = vmatprep.subr.mxu0 %v952_v1  ;;  %828 = vmatprep.subr.mxu1 %v952_v1 }
   0xc   :  { %816 = vmatpush3.msra.mxu0 %v28_v6  ;;  %829 = vmatpush3.msra.mxu1 %v17_v12 }
   0xd   :  { %817 = vmatprep.subr.mxu0 %v952_v1  ;;  %833 = vmatprep.subr.mxu1 %v952_v1 }
   0xe   :  { %818 = vmatpush3.msra.mxu0 %v27_v7  ;;  %894 = vset.pattern.permute.xlu1 %v956_v37 }
   0xf   :  { %820 = vmatmul.mubr.msk.f32.vlgmr.msra.gmra.mxu0 %vm34_vm2, %v1016_v8  ;;  %844 = vmatprep.subr.mxu0 %v952_v1 }
  0x10   :  { %852 = vmatprep.mubr.msk.f32.mxu0 %vm953_vm1, %v952_v1  ;;  %845 = vmatpush3.msra.mxu0 %v1026_v9 }
  0x11   :  { %846 = vmatprep.subr.mxu0 %v952_v1 }
  0x12   :  { %847 = vmatpush3.msra.mxu0 %v1031_v10 }
  0x13   :  { %848 = vmatprep.subr.mxu0 %v952_v1 }
  0x14   :  { %849 = vmatpush3.msra.mxu0 %v1039_v11 }
  0x15   :  { %850 = vmatprep.subr.mxu0 %v952_v1 }
  0x16   :  { %851 = vmatpush3.msra.mxu0 %v17_v12 }
  0x17   :  { %866 = vmatprep.subr.mxu0 %v952_v1 }
  0xcf   :  { %v1055_v13 = vpop.f32.mrf.mxu0 }
  0xd0   :  { %898 = vtanh.f32 %v1055_v13 }
  0xd1   :  { %v821_v14 = vpop.f32.mrf.mxu0 }
  0xdd   :  { %v1058_v15 = vpop.eup %898 }
  0xde   :  { %831 = vmatmul.mubr.msk.f32.vlgmr.msra.gmra.mxu1 %vm118_vm3, %v1058_v15 }
  0xdf   :  { %834 = vmatpush3.msra.mxu1 %v1026_v9  ;;  %841 = vmatprep.mubr.msk.f32.mxu1 %vm953_vm1, %v952_v1 }
  0xe0   :  { %835 = vmatprep.subr.mxu1 %v952_v1 }
  0xe1   :  { %836 = vmatpush3.msra.mxu1 %v1031_v10 }
  0xe2   :  { %837 = vmatprep.subr.mxu1 %v952_v1 }
  0xe3   :  { %838 = vmatpush3.msra.mxu1 %v1039_v11 }
  0xe4   :  { %839 = vmatprep.subr.mxu1 %v952_v1 }
  0xe5   :  { %840 = vmatpush3.msra.mxu1 %v17_v12 }
  0xe6   :  { %855 = vmatprep.subr.mxu1 %v952_v1 }
 0x19e   :  { %v188_v16 = vpop.f32.mrf.mxu1 }
 0x19f   :  { %225 = vrot.lane.b32.xlu0 %v188_v16, %s954_s7 }
 0x1a0   :  { %v832_v17 = vpop.f32.mrf.mxu1 }
 0x211   :  { %v226_v18 = vpop.permute.xlu0 %225 }
 0x212   :  { %v228_v19 = vadd.f32 %v226_v18, %v1055_v13 }
 0x214   :  { %900 = vtanh.f32 %v228_v19 }
 0x221   :  { %v1073_v20 = vpop.eup %900 }
 0x222   :  { %231 = vrot.lane.b32.xlu0 %v1073_v20, %s955_s8 }
 0x294   :  { %v232_v21 = vpop.permute.xlu0 %231 }
 0x295   :  { %842 = vmatmul.mubr.msk.f32.vlgmr.msra.gmra.mxu1 %vm118_vm3, %v232_v21 }
 0x296   :  { %856 = vmatpush3.msra.mxu1 %v1026_v9  ;;  %863 = vmatprep.mubr.msk.f32.mxu1 %vm953_vm1, %v952_v1 }
 0x297   :  { %857 = vmatprep.subr.mxu1 %v952_v1 }
 0x298   :  { %858 = vmatpush3.msra.mxu1 %v1031_v10 }
 0x299   :  { %859 = vmatprep.subr.mxu1 %v952_v1 }
 0x29a   :  { %860 = vmatpush3.msra.mxu1 %v1039_v11 }
 0x29b   :  { %861 = vmatprep.subr.mxu1 %v952_v1 }
 0x29c   :  { %862 = vmatpush3.msra.mxu1 %v17_v12 }
 0x29d   :  { %877 = vmatprep.subr.bf16.mxu1 %v952_v1 }
 0x355   :  { %v301_v22 = vpop.f32.mrf.mxu1 }
 0x356   :  { %334 = vrot.lane.b32.xlu1 %v301_v22, %s954_s7 }
 0x357   :  { %v843_v23 = vpop.f32.mrf.mxu1 }
 0x358   :  { %v958_v23 = vmov 48  }
 0x3c8   :  { %v335_v24 = vpop.permute.xlu1 %334 }
 0x3c9   :  { %v337_v25 = vadd.f32 %v335_v24, %v1055_v13 }
 0x3cb   :  { %902 = vtanh.f32 %v337_v25  ;;  %v23_v25 = vld [vmem:[%s1243_s2 + $0x30] sm:$0xff] }
 0x3d8   :  { %v1089_v26 = vpop.eup %902 }
 0x3d9   :  { %340 = vrot.lane.b32.xlu1 %v1089_v26, %s955_s8 }
 0x44b   :  { %v341_v27 = vpop.permute.xlu1 %340 }
 0x44c   :  { %853 = vmatmul.mubr.msk.f32.vlgmr.msra.gmra.mxu0 %vm118_vm3, %v341_v27  ;;  %v24_v27 = vld [vmem:[%s1243_s2 + $0x38] sm:$0xff] }
 0x44d   :  { %867 = vmatpush3.msra.mxu0 %v1026_v9  ;;  %874 = vmatprep.mubr.msk.f32.mxu0 %vm953_vm1, %v952_v1 }
 0x44e   :  { %868 = vmatprep.subr.mxu0 %v952_v1 }
 0x44f   :  { %869 = vmatpush3.msra.mxu0 %v1031_v10 }
 0x450   :  { %870 = vmatprep.subr.mxu0 %v952_v1 }
 0x451   :  { %871 = vmatpush3.msra.mxu0 %v1039_v11 }
 0x452   :  { %872 = vmatprep.subr.mxu0 %v952_v1 }
 0x453   :  { %873 = vmatpush3.msra.mxu0 %v17_v12 }
 0x50c   :  { %v1102_v28 = vpop.f32.mrf.mxu0 }
 0x50d   :  { %443 = vrot.lane.b32.xlu0 %v1102_v28, %s954_s7 }
 0x50e   :  { %v854_v29 = vpop.f32.mrf.mxu0 }
 0x57f   :  { %v444_v30 = vpop.permute.xlu0 %443 }
 0x580   :  { %v446_v31 = vadd.f32 %v444_v30, %v1055_v13 }
 0x582   :  { %904 = vtanh.f32 %v446_v31 }
 0x58f   :  { %v1107_v32 = vpop.eup %904 }
 0x590   :  { %449 = vrot.lane.b32.xlu1 %v1107_v32, %s955_s8 }
 0x602   :  { %v450_v33 = vpop.permute.xlu1 %449 }
 0x603   :  { %864 = vmatmul.mubr.msk.f32.vlgmr.msra.gmra.mxu1 %vm118_vm3, %v450_v33 }
 0x604   :  { %881 = vmatprep.mubr.msk.bf16.mxu1 %vm953_vm1, %v952_v1 }
 0x6c3   :  { %v519_v34 = vpop.f32.mrf.mxu1 }
 0x6c4   :  { %552 = vrot.lane.b32.xlu0 %v519_v34, %s954_s7 }
 0x6c5   :  { %v865_v35 = vpop.f32.mrf.mxu1 }
 0x6c8   :  { %197 = vrot.lane.b32.xlu0 %v757_v36, %s954_s7 }
 0x736   :  { %v553_v38 = vpop.permute.xlu0 %552 }
 0x737   :  { %v555_v39 = vadd.f32 %v553_v38, %v1055_v13 }
 0x739   :  { %906 = vtanh.f32 %v555_v39 }
 0x73a   :  { %v198_v40 = vpop.permute.xlu0 %197 }
 0x73b   :  { %v200_v41 = vadd.f32 %v198_v40, %v188_v16  ;;  %v305_v42 = vadd.f32 %v301_v22, %v198_v40  ;;  %v523_v43 = vadd.f32 %v519_v34, %v198_v40  ;;  %v414_v7 = vadd.f32 %v1102_v28, %v198_v40 }
 0x73c   :  { %v957_v22 = vmov 49   ;;  %v675_v28 = vpack.c.bf16 %v24_v27, %v23_v25 }
 0x73d   :  { %v758_v44 = vmul.f32 -1.442695, %v200_v41  ;;  %v760_v45 = vmul.f32 -1.442695, %v305_v42  ;;  %v764_v46 = vmul.f32 -1.442695, %v523_v43 }
 0x73e   :  { %v762_v9 = vmul.f32 -1.442695, %v414_v7  ;;  %878 = vmatpush3.bf16.msra.mxu1 %v675_v28 }
 0x73f   :  { %908 = vpow2.f32 %v758_v44  ;;  %879 = vmatprep.subr.bf16.mxu1 %v952_v1 }
 0x740   :  { %910 = vpow2.f32 %v760_v45  ;;  %v21_v45 = vld [vmem:[%s1243_s2 + $0x20] sm:$0xff] }
 0x741   :  { %912 = vpow2.f32 %v764_v46  ;;  %v22_v46 = vld [vmem:[%s1243_s2 + $0x28] sm:$0xff] }
 0x746   :  { %v1120_v47 = vpop.eup %906 }
 0x747   :  { %558 = vrot.lane.b32.xlu1 %v1120_v47, %s955_s8 }
 0x74c   :  { %v909_v48 = vpop.eup %908 }
 0x74d   :  { %v911_v49 = vpop.eup %910  ;;  %v204_v50 = vadd.f32 1.0, %v909_v48  ;;  %v674_v48 = vpack.c.bf16 %v22_v46, %v21_v45 }
 0x74e   :  { %v309_v51 = vadd.f32 1.0, %v911_v49  ;;  %v913_v52 = vpop.eup %912 }
 0x74f   :  { %914 = vrcp.f32 %v204_v50  ;;  %v527_v53 = vadd.f32 1.0, %v913_v52  ;;  %880 = vmatpush3.bf16.msra.mxu1 %v674_v48 }
 0x750   :  { %916 = vrcp.f32 %v309_v51 }
 0x751   :  { %918 = vrcp.f32 %v527_v53 }
 0x752   :  { %920 = vpow2.f32 %v762_v9 }
 0x75c   :  { %v915_v54 = vpop.eup %914 }
 0x75d   :  { %v917_v55 = vpop.eup %916  ;;  %209 = vperm.xlu1 %894, %v915_v54  }
 0x75e   :  { %314 = vperm.xlu0 %895, %v917_v55   ;;  %v919_v56 = vpop.eup %918 }
 0x75f   :  { %v921_v10 = vpop.eup %920 }
 0x760   :  { %v418_v11 = vadd.f32 1.0, %v921_v10 }
 0x762   :  { %532 = vperm.xlu0 %895, %v919_v56   ;;  %922 = vrcp.f32 %v418_v11 }
 0x766   :  { %897 = vset.pattern.permute.xlu0 %v958_v23  ;;  %v767_v23 = vld [vmem:[%s1243_s2 + $0x41] ss:$0 sm:$0xff]  ;;  %s746_s2 = sshll.u32 %s960_s21, 4  ;;  %s747_s2 = int_to_ptr.vmem [resolvable:$true] %s746_s2 }
 0x767   :  { %s930_s22 = scalar_lea.vmem %s747_s2, 128  ;;  %p935_p1 = scmp.lt.s32.totalorder %s747_s2, %s747_s2 }
 0x768   :  { %p931_p0 = scmp.ne.s32.totalorder %s747_s2, %s930_s22  ;;  %p936_p2 = scmp.lt.s32.totalorder %s930_s22, %s930_s22 }
 0x76a   :  { %p937_p3 = por %p936_p2, %p935_p1 }
 0x76c   :  { %p938_p4 = pnand %p937_p3, %p931_p0 }
 0x76f   :  { %v923_v18 = vpop.eup %922 }
 0x7b9   :  { %v559_v57 = vpop.permute.xlu1 %558 }
 0x7ba   :  { %875 = vmatmul.mubr.msk.f32.vlgmr.msra.gmra.mxu0 %vm118_vm3, %v559_v57 }
 0x7d8   :  { %v1125_v58 = vpop.permute.xlu1 %209 }
 0x7d9   :  { %vm213_vm4 = vcmp.ge.f32.partialorder %v1125_v58, 0.99  ;;  %v220_v59 = vsub.f32 1.0, %v1125_v58  ;;  %v315_v60 = vpop.permute.xlu0 %314 }
 0x7da   :  { %v1130_v61 = vadd.f32 %v315_v60, %v1125_v58  ;;  %v1141_v2 = vsel %vm213_vm4, 1.0, %v1125_v58 }
 0x7db   :  { %v222_v62 = vsel %vm213_vm4, 1.0, %v220_v59  ;;  %v221_v63 = vsel %vm213_vm4, 0.0, %v220_v59 }
 0x7dc   :  { %vm318_vm5 = vcmp.ge.f32.partialorder %v1130_v61, 0.99  ;;  %v329_v0 = vsub.f32 1.0, %v1130_v61 }
 0x7dd   :  { %v319_v3 = vsel %vm318_vm5, %v221_v63, %v315_v60  ;;  %v533_v31 = vpop.permute.xlu0 %532 }
 0x7de   :  { %v320_v4 = vmul.f32 %v1073_v20, %v319_v3  ;;  %v326_v5 = vadd.f32 %v319_v3, %v1141_v2  ;;  %v331_v6 = vsel %vm318_vm5, %v222_v62, %v329_v0  ;;  %v330_v33 = vsel %vm318_vm5, 0.0, %v329_v0 }
 0x7e0   :  { %322 = vrot.lane.b32.xlu0 %v320_v4, %s955_s8 }
 0x852   :  { %v323_v60 = vpop.permute.xlu0 %322 }
 0x87a   :  { %v628_v12 = vpop.f32.mrf.mxu0 }
 0x87b   :  { %v632_v14 = vadd.f32 %v628_v12, %v198_v40  ;;  %661 = vrot.lane.b32.xlu1 %v628_v12, %s954_s7 }
 0x87c   :  { %v876_v16 = vpop.f32.mrf.mxu0 }
 0x87d   :  { %v766_v17 = vmul.f32 -1.442695, %v632_v14 }
 0x87f   :  { %924 = vpow2.f32 %v766_v17  ;;  %423 = vperm.xlu1 %894, %v923_v18   ;;  %v959_v18 = vmov 2.0  }
 0x88c   :  { %v925_v19 = vpop.eup %924 }
 0x88d   :  { %v636_v20 = vadd.f32 1.0, %v925_v19  ;;  %v223_v19 = vsel %vm213_vm4, 0.0, %v959_v18 }
 0x88f   :  { %926 = vrcp.f32 %v636_v20 }
 0x89c   :  { %v927_v21 = vpop.eup %926 }
 0x89d   :  { %641 = vperm.xlu1 %894, %v927_v21  }
 0x8a1   :  { %896 = vset.pattern.permute.xlu1 %v957_v22  ;;  %v332_v22 = vsel %vm318_vm5, %v223_v19, 3.0 }
 0x8ed   :  { %v662_v24 = vpop.permute.xlu1 %661 }
 0x8ee   :  { %v664_v44 = vadd.f32 %v662_v24, %v1055_v13 }
 0x8f0   :  { %928 = vtanh.f32 %v664_v44 }
 0x8fa   :  { %v424_v29 = vpop.permute.xlu1 %423 }
 0x8fb   :  { %v1160_v30 = vadd.f32 %v424_v29, %v1130_v61 }
 0x8fd   :  { %vm427_vm6 = vcmp.ge.f32.partialorder %v1160_v30, 0.99  ;;  %v438_v34 = vsub.f32 1.0, %v1160_v30  ;;  %v1167_v35 = vadd.f32 %v533_v31, %v1160_v30  ;;  %v929_v52 = vpop.eup %928 }
 0x8fe   :  { %v428_v36 = vsel %vm427_vm6, %v330_v33, %v424_v29  ;;  %v441_v24 = vsel %vm427_vm6, %v332_v22, 4.0 }
 0x8ff   :  { %v429_v37 = vmul.f32 %v1089_v26, %v428_v36  ;;  %v435_v1 = vadd.f32 %v428_v36, %v326_v5  ;;  %vm536_vm7 = vcmp.ge.f32.partialorder %v1167_v35, 0.99  ;;  %v439_v38 = vsel %vm427_vm6, 0.0, %v438_v34 }
 0x900   :  { %v537_v39 = vsel %vm536_vm7, %v439_v38, %v533_v31  ;;  %v547_v40 = vsub.f32 1.0, %v1167_v35  ;;  %v440_v41 = vsel %vm427_vm6, %v331_v6, %v438_v34  ;;  %v550_v58 = vsel %vm536_vm7, %v441_v24, 5.0 }
 0x901   :  { %431 = vrot.lane.b32.xlu1 %v429_v37, %s955_s8  ;;  %v538_v42 = vmul.f32 %v1107_v32, %v537_v39  ;;  %v544_v43 = vadd.f32 %v537_v39, %v435_v1 }
 0x902   :  { %v549_v26 = vsel %vm536_vm7, %v440_v41, %v547_v40  ;;  %v548_v50 = vsel %vm536_vm7, 0.0, %v547_v40 }
 0x903   :  { %540 = vrot.lane.b32.xlu0 %v538_v42, %s955_s8 }
 0x918   :  { %v642_v49 = vpop.permute.xlu1 %641 }
 0x919   :  { %v1193_v32 = vadd.f32 %v642_v49, %v1167_v35 }
 0x91b   :  { %vm645_vm8 = vcmp.ge.f32.partialorder %v1193_v32, 0.99  ;;  %v656_v13 = vsub.f32 1.0, %v1193_v32 }
 0x91c   :  { %v646_v51 = vsel %vm645_vm8, %v548_v50, %v642_v49  ;;  %v659_v61 = vsel %vm645_vm8, %v550_v58, 6.0 }
 0x91d   :  { %v647_v53 = vmul.f32 %v1120_v47, %v646_v51  ;;  %v653_v54 = vadd.f32 %v646_v51, %v544_v43  ;;  %v657_v55 = vsel %vm645_vm8, 0.0, %v656_v13  ;;  %v658_v56 = vsel %vm645_vm8, %v549_v26, %v656_v13 }
 0x91e   :  { %v666_v57 = vmul.f32 %v929_v52, %v657_v55  ;;  %v215_v47 = vmul.f32 %v1058_v15, %v1141_v2 }
 0x91f   :  { %649 = vrot.lane.b32.xlu1 %v647_v53, %s955_s8  ;;  %v672_v59 = vadd.f32 %v657_v55, %v653_v54 }
 0x920   :  { %668 = vrot.lane.b32.xlu0 %v666_v57, %s955_s8  ;;  %v325_v63 = vadd.f32 %v323_v60, %v215_v47 }
 0x921   :  { %v680_v28 = vmul.f32 %v767_v23, %v672_v59 }
 0x923   :  { %113 = vperm.xlu1 %896, %v1016_v8  }
 0x924   :  { %725 = vperm.xlu0 %897, %v1016_v8  }
 0x973   :  { %v432_v62 = vpop.permute.xlu1 %431 }
 0x974   :  { %v434_v0 = vadd.f32 %v432_v62, %v325_v63 }
 0x975   :  { %v541_v3 = vpop.permute.xlu0 %540 }
 0x976   :  { %v543_v4 = vadd.f32 %v541_v3, %v434_v0 }
 0x991   :  { %v650_v5 = vpop.permute.xlu1 %649 }
 0x992   :  { %v652_v6 = vadd.f32 %v650_v5, %v543_v4  ;;  %v669_v7 = vpop.permute.xlu0 %668 }
 0x994   :  { %v671_v9 = vadd.f32 %v669_v7, %v652_v6 }
 0x996   :  { %v673_v10 = vpack.c.bf16 %v671_v9, %v671_v9  ;;  %731 = vrot.lane.b32.xlu1 %v671_v9, %s954_s7 }
 0x998   :  { %882 = vmatmul.mubr.msk.bf16.vlgmr.msra.gmra.mxu1 %vm118_vm3, %v673_v10 }
 0x99e   :  { %v114_v11 = vpop.permute.xlu1 %113 }
 0x99f   :  { %v116_v8 = vadd.f32 1.0, %v114_v11  ;;  %v726_v21 = vpop.permute.xlu0 %725 }
 0x9a0   :  { %v728_v27 = vadd.f32 %v726_v21, %v658_v56 }
 0x9a1   :  { %v218_v12 = vadd.f32 1.0, %v116_v8 }
 0x9a2   :  { %v729_v34 = vadd.f32 %v728_v27, %v659_v61 }
 0x9a3   :  { %v219_v15 = vsel %vm213_vm4, %v116_v8, %v218_v12 }
 0x9a4   :  { %v327_v2 = vadd.f32 1.0, %v219_v15 }
 0x9a6   :  { %v328_v14 = vsel %vm318_vm5, %v219_v15, %v327_v2 }
 0x9a7   :  { %v436_v16 = vadd.f32 1.0, %v328_v14 }
 0x9a9   :  { %v437_v17 = vsel %vm427_vm6, %v328_v14, %v436_v16 }
 0x9aa   :  { %v545_v20 = vadd.f32 1.0, %v437_v17 }
 0x9ac   :  { %v546_v25 = vsel %vm536_vm7, %v437_v17, %v545_v20 }
 0x9ad   :  { %v654_v31 = vadd.f32 1.0, %v546_v25 }
 0x9af   :  { %v655_v35 = vsel %vm645_vm8, %v546_v25, %v654_v31 }
 0xa08   :  { %v732_v30 = vpop.permute.xlu1 %731 }
 0xa58   :  { %v718_v29 = vpop.f32.mrf.mxu1 }
 0xa59   :  { %v719_v33 = vadd.f32 %v718_v29, %v680_v28 }
 0xa5a   :  { %v883_v36 = vpop.f32.mrf.mxu1 }
 0xa5b   :  { %v734_v37 = vsel %vm118_vm3, %v719_v33, %v732_v30 }
 0xa5c   :  { %v721_v1 = vpop.f32.mrf.mxu1  ;;  %v736_v38 = vsel %vm735_vm9, %v734_v37, %v729_v34 }
 0xa5d   :  { %v738_v39 = vsel %vm737_vm10, %v736_v38, %v655_v35 }
 0xa5e   :  { %v884_v40 = vpop.f32.mrf.mxu1  ;;  %739 = vst [vmem:[#allocation2] sm:$0xff] %v738_v39 }
 0xa5f   :  { %941 = shalt.err (!%p938_p4)
}
 0xa60   :  { %749 = dma.vmem_to_hbm [thread:$0]  %s747_s2, 128, %s1244_s3, [#allocation3]  }
 0xa61   :  { %950 = dma.done.wait [#allocation3], 128  }
 0xa62   :  { %951 = vsyncadd [#allocation3], 4294967168 }
 0xa63   :  { %753 = vsyncpa [#allocation3], 1 }

</bundles_post_ra>
